<compile_context>
chip_gen: v6e
topology: v6e:2x2x1
jax: 0.10.0
libtpu: 0.0.40
codegen_flags: <defaults>
</compile_context>

<pallas_src>
import jax
import jax.numpy as jnp
from jax.experimental import pallas as pl
from jax.experimental.pallas import tpu as pltpu

LN_EPS = 1e-5
_INV_SQRT2 = 0.7071067811865476
_OUT_LANES = 128        # lane-dense classifier output width
_NUM_CLASSES = 2        # real classifier width


def _round_up(x, m):
    return ((x + m - 1) // m) * m


def _vmem_capacity_bytes():
    """Per-TensorCore VMEM capacity; conservative 64 MiB fallback (v7x)."""
    try:
        return int(pltpu.get_tpu_info().vmem_capacity_bytes)
    except Exception:
        return 64 * 1024 * 1024


def _head_kernel(x_ref, w1_ref, b1_ref, g_ref, beta_ref, w2_ref, b2_ref, o_ref):
    # dense: (tm, H) @ (H, H), bf16 (or f32) operands, f32 MXU accumulation.
    x = x_ref[...].astype(w1_ref.dtype)
    h = jnp.dot(x, w1_ref[...], preferred_element_type=jnp.float32)
    h = h + b1_ref[...]

    # exact (erf) GELU, matching nn.GELU() default.
    h = 0.5 * h * (1.0 + jax.lax.erf(h * _INV_SQRT2))

    # LayerNorm (eps=1e-5), two-pass variance (matches PyTorch, no cancellation).
    mu = jnp.mean(h, axis=-1, keepdims=True)
    d = h - mu
    var = jnp.mean(d * d, axis=-1, keepdims=True)
    hn = d * jax.lax.rsqrt(var + LN_EPS)
    hn = hn * g_ref[...] + beta_ref[...]

    # classifier: (tm, H) @ (H, 128) + (1, 128); lanes >= 2 of w2/b2 are zero
    # padding, so the output store is a full-width (lane-dense) vst.
    out = jnp.dot(hn, w2_ref[...], preferred_element_type=jnp.float32)
    out = out + b2_ref[...]
    o_ref[...] = out.astype(o_ref.dtype)


def binary_prediction_head(hidden_states, params, *, tm=512,
                           matmul_dtype=jnp.bfloat16):
    """hidden_states: (B, S, H). Returns logits (B, S, 2)."""
    B, S, H = hidden_states.shape
    N = B * S
    out_dtype = hidden_states.dtype

    x2d = hidden_states.reshape(N, H)

    w1 = params["w1"]
    if matmul_dtype is not None and w1.dtype != matmul_dtype:
        w1 = w1.astype(matmul_dtype)
    b1, gamma, beta = params["b1"], params["gamma"], params["beta"]

    # Lane-dense classifier: zero-pad (H, 2) -> (H, 128).
    w2p = jnp.pad(params["w2"], ((0, 0), (0, _OUT_LANES - _NUM_CLASSES)))
    b2p = jnp.pad(params["b2"], ((0, 0), (0, _OUT_LANES - _NUM_CLASSES)))

    # ---- per-core VMEM budget -> row tile size --------------------------------
    cap = _vmem_capacity_bytes()          # per TC: 64 MiB v7x, 128 MiB v5e/v6e
    budget = int(cap * 0.80)              # headroom for compiler-internal scratch
    # Constant operands are DMA'd once per core (block index never changes) but
    # the default pipeliner still allocates two buffers, so budget 2 copies.
    weight_bytes = 2 * (H * H * w1.dtype.itemsize      # dense weight
                        + 3 * H * 4                    # dense bias + LN gamma/beta
                        + H * _OUT_LANES * 4           # padded classifier weight
                        + _OUT_LANES * 4)              # padded classifier bias
    per_row_bytes = (2 * H * x2d.dtype.itemsize                          # x tile
                     + 2 * _OUT_LANES * jnp.dtype(out_dtype).itemsize    # out tile
                     + 3 * H * 4)                      # f32 intermediates headroom
    if budget > weight_bytes:
        tm_fit = (budget - weight_bytes) // per_row_bytes
    else:
        # TODO(synk): K-tile w1 (contraction grid axis + accumulator scratch +
        # pl.when finalize) when the resident H x H weight alone exceeds the
        # per-core VMEM budget (e.g. f32 H>=4096 on v7x).
        tm_fit = 8
    tm_eff = int(max(8, min(tm, tm_fit, _round_up(N, 8))))
    tm_eff = max(8, (tm_eff // 8) * 8)    # sublane-aligned row tile

    grid = (pl.cdiv(N, tm_eff),)          # partial last block handled by Pallas

    estimate = weight_bytes + tm_eff * per_row_bytes
    vmem_limit = int(min(int(cap * 0.90), estimate + 16 * 1024 * 1024))

    out = pl.pallas_call(
        _head_kernel,
        out_shape=jax.ShapeDtypeStruct((N, _OUT_LANES), out_dtype),
        grid_spec=pltpu.PrefetchScalarGridSpec(
            num_scalar_prefetch=0,
            grid=grid,
            in_specs=[
                pl.BlockSpec((tm_eff, H), lambda i: (i, 0)),        # x row tile
                pl.BlockSpec((H, H), lambda i: (0, 0)),             # dense weight
                pl.BlockSpec((1, H), lambda i: (0, 0)),             # dense bias
                pl.BlockSpec((1, H), lambda i: (0, 0)),             # LN gamma
                pl.BlockSpec((1, H), lambda i: (0, 0)),             # LN beta
                pl.BlockSpec((H, _OUT_LANES), lambda i: (0, 0)),    # padded classifier weight
                pl.BlockSpec((1, _OUT_LANES), lambda i: (0, 0)),    # padded classifier bias
            ],
            out_specs=pl.BlockSpec((tm_eff, _OUT_LANES), lambda i: (i, 0)),
        ),
        compiler_params=pltpu.CompilerParams(
            dimension_semantics=("parallel",),
            vmem_limit_bytes=vmem_limit,
        ),
    )(x2d, w1, b1, gamma, beta, w2p, b2p)

    return out[:, :_NUM_CLASSES].reshape(B, S, _NUM_CLASSES)


def init_params(key, hidden_size):
    """Deterministic synthetic parameters (shapes match the PyTorch module)."""
    k1, k2, k3, k4 = jax.random.split(key, 4)
    scale1 = 1.0 / jnp.sqrt(hidden_size)
    return {
        # stored pre-transposed as (in, out) so the kernel does x @ W
        "w1": jax.random.uniform(k1, (hidden_size, hidden_size),
                                 jnp.float32, -scale1, scale1),
        "b1": jax.random.uniform(k2, (1, hidden_size),
                                 jnp.float32, -scale1, scale1),
        "gamma": jnp.ones((1, hidden_size), jnp.float32),
        "beta": jnp.zeros((1, hidden_size), jnp.float32),
        "w2": jax.random.uniform(k3, (hidden_size, 2),
                                 jnp.float32, -scale1, scale1),
        "b2": jax.random.uniform(k4, (1, 2),
                                 jnp.float32, -scale1, scale1),
    }


def _reference(hidden_states, params, matmul_dtype=None):
    """Pure-JAX reference; optionally mirrors the kernel's bf16 dense matmul."""
    x, w1 = hidden_states, params["w1"]
    if matmul_dtype is not None:
        x = x.astype(matmul_dtype)
        w1 = w1.astype(matmul_dtype)
    h = jnp.dot(x, w1, preferred_element_type=jnp.float32) + params["b1"][0]
    h = 0.5 * h * (1.0 + jax.lax.erf(h * _INV_SQRT2))
    mu = jnp.mean(h, axis=-1, keepdims=True)
    d = h - mu
    var = jnp.mean(d * d, axis=-1, keepdims=True)
    hn = d * jax.lax.rsqrt(var + LN_EPS)
    hn = hn * params["gamma"][0] + params["beta"][0]
    return (jnp.dot(hn, params["w2"], preferred_element_type=jnp.float32)
            + params["b2"][0])


if __name__ == "__main__":
    B, S, H = 2, 8, 32
    key = jax.random.PRNGKey(0)
    k_x, k_p = jax.random.split(key)

    hidden_states = jax.random.normal(k_x, (B, S, H), jnp.float32)
    params = init_params(k_p, H)

    out = binary_prediction_head(hidden_states, params)   # default bf16 matmul
    out = jax.block_until_ready(out)
    assert out.shape == (B, S, 2)

    # Check against a reference that uses the same bf16 dense matmul.
    ref_bf16 = _reference(hidden_states, params, matmul_dtype=jnp.bfloat16)
    assert jnp.allclose(out, ref_bf16, atol=2e-3, rtol=2e-3), (
        float(jnp.max(jnp.abs(out - ref_bf16))))

    # Coarse sanity check against the pure-f32 reference (bf16 rounding only).
    ref_f32 = _reference(hidden_states, params)
    assert jnp.allclose(out, ref_f32, atol=5e-2, rtol=5e-2), (
        float(jnp.max(jnp.abs(out - ref_f32))))

    print("KERNEL_OK")
</pallas_src>

<mosaic_0001>
module attributes {stable_mosaic.version = 11 : i64} {
  func.func @_head_kernel(%arg0: i32, %arg1: memref<16x32xf32, #tpu.memory_space<vmem>>, %arg2: memref<32x32xbf16, #tpu.memory_space<vmem>>, %arg3: memref<1x32xf32, #tpu.memory_space<vmem>>, %arg4: memref<1x32xf32, #tpu.memory_space<vmem>>, %arg5: memref<1x32xf32, #tpu.memory_space<vmem>>, %arg6: memref<32x128xf32, #tpu.memory_space<vmem>>, %arg7: memref<1x128xf32, #tpu.memory_space<vmem>>, %arg8: memref<16x128xf32, #tpu.memory_space<vmem>>) attributes {dimension_semantics = [#tpu.dimension_semantics<parallel>], iteration_bounds = array<i64: 1>, scalar_prefetch = 0 : i64, scratch_operands = 0 : i64, tpu.core_type = #tpu.core_type<tc>, window_params = [{transform_indices = @transform_0, window_bounds = array<i64: 16, 32>}, {pipeline_mode = #tpu.pipeline_mode<synchronous>, transform_indices = @transform_1, window_bounds = array<i64: 32, 32>}, {pipeline_mode = #tpu.pipeline_mode<synchronous>, transform_indices = @transform_2, window_bounds = array<i64: 1, 32>}, {pipeline_mode = #tpu.pipeline_mode<synchronous>, transform_indices = @transform_3, window_bounds = array<i64: 1, 32>}, {pipeline_mode = #tpu.pipeline_mode<synchronous>, transform_indices = @transform_4, window_bounds = array<i64: 1, 32>}, {pipeline_mode = #tpu.pipeline_mode<synchronous>, transform_indices = @transform_5, window_bounds = array<i64: 32, 128>}, {pipeline_mode = #tpu.pipeline_mode<synchronous>, transform_indices = @transform_6, window_bounds = array<i64: 1, 128>}, {transform_indices = @transform_7, window_bounds = array<i64: 16, 128>}]} {
    %c0 = arith.constant 0 : index
    %c0_0 = arith.constant 0 : index
    %0 = vector.load %arg1[%c0, %c0_0] : memref<16x32xf32, #tpu.memory_space<vmem>>, vector<16x32xf32>
    %1 = arith.truncf %0 : vector<16x32xf32> to vector<16x32xbf16>
    %c0_1 = arith.constant 0 : index
    %c0_2 = arith.constant 0 : index
    %2 = vector.load %arg2[%c0_1, %c0_2] : memref<32x32xbf16, #tpu.memory_space<vmem>>, vector<32x32xbf16>
    %cst = arith.constant dense<0.000000e+00> : vector<16x32xf32>
    %3 = tpu.matmul %1, %2, %cst {dimension_numbers = #tpu.dot_dimension_numbers<[1], [0], [0], [1], [0, 0, 1, 1], [], []>} : vector<16x32xbf16>, vector<32x32xbf16>, vector<16x32xf32> -> vector<16x32xf32>
    %c0_3 = arith.constant 0 : index
    %c0_4 = arith.constant 0 : index
    %4 = vector.load %arg3[%c0_3, %c0_4] : memref<1x32xf32, #tpu.memory_space<vmem>>, vector<1x32xf32>
    %5 = vector.broadcast %4 : vector<1x32xf32> to vector<16x32xf32>
    %6 = arith.addf %3, %5 : vector<16x32xf32>
    %cst_5 = arith.constant 5.000000e-01 : f32
    %7 = vector.broadcast %cst_5 : f32 to vector<16x32xf32>
    %8 = arith.mulf %7, %6 : vector<16x32xf32>
    %cst_6 = arith.constant 0.707106769 : f32
    %9 = vector.broadcast %cst_6 : f32 to vector<16x32xf32>
    %10 = arith.mulf %6, %9 : vector<16x32xf32>
    %11 = math.erf %10 : vector<16x32xf32>
    %cst_7 = arith.constant 1.000000e+00 : f32
    %12 = vector.broadcast %cst_7 : f32 to vector<16x32xf32>
    %13 = arith.addf %12, %11 : vector<16x32xf32>
    %14 = arith.mulf %8, %13 : vector<16x32xf32>
    %cst_8 = arith.constant dense<0.000000e+00> : vector<16xf32>
    %15 = vector.multi_reduction <add>, %14, %cst_8 [1] : vector<16x32xf32> to vector<16xf32>
    %16 = vector.shape_cast %15 : vector<16xf32> to vector<16x1xf32>
    %cst_9 = arith.constant 3.200000e+01 : f32
    %17 = vector.broadcast %cst_9 : f32 to vector<16x1xf32>
    %18 = arith.divf %16, %17 : vector<16x1xf32>
    %19 = vector.broadcast %18 : vector<16x1xf32> to vector<16x32xf32>
    %20 = arith.subf %14, %19 : vector<16x32xf32>
    %21 = arith.mulf %20, %20 : vector<16x32xf32>
    %cst_10 = arith.constant dense<0.000000e+00> : vector<16xf32>
    %22 = vector.multi_reduction <add>, %21, %cst_10 [1] : vector<16x32xf32> to vector<16xf32>
    %23 = vector.shape_cast %22 : vector<16xf32> to vector<16x1xf32>
    %cst_11 = arith.constant 3.200000e+01 : f32
    %24 = vector.broadcast %cst_11 : f32 to vector<16x1xf32>
    %25 = arith.divf %23, %24 : vector<16x1xf32>
    %cst_12 = arith.constant 9.99999974E-6 : f32
    %26 = vector.broadcast %cst_12 : f32 to vector<16x1xf32>
    %27 = arith.addf %25, %26 : vector<16x1xf32>
    %28 = math.rsqrt %27 : vector<16x1xf32>
    %29 = vector.broadcast %28 : vector<16x1xf32> to vector<16x32xf32>
    %30 = arith.mulf %20, %29 : vector<16x32xf32>
    %c0_13 = arith.constant 0 : index
    %c0_14 = arith.constant 0 : index
    %31 = vector.load %arg4[%c0_13, %c0_14] : memref<1x32xf32, #tpu.memory_space<vmem>>, vector<1x32xf32>
    %32 = vector.broadcast %31 : vector<1x32xf32> to vector<16x32xf32>
    %33 = arith.mulf %30, %32 : vector<16x32xf32>
    %c0_15 = arith.constant 0 : index
    %c0_16 = arith.constant 0 : index
    %34 = vector.load %arg5[%c0_15, %c0_16] : memref<1x32xf32, #tpu.memory_space<vmem>>, vector<1x32xf32>
    %35 = vector.broadcast %34 : vector<1x32xf32> to vector<16x32xf32>
    %36 = arith.addf %33, %35 : vector<16x32xf32>
    %c0_17 = arith.constant 0 : index
    %c0_18 = arith.constant 0 : index
    %37 = vector.load %arg6[%c0_17, %c0_18] : memref<32x128xf32, #tpu.memory_space<vmem>>, vector<32x128xf32>
    %cst_19 = arith.constant dense<0.000000e+00> : vector<16x128xf32>
    %38 = tpu.matmul %36, %37, %cst_19 {dimension_numbers = #tpu.dot_dimension_numbers<[1], [0], [0], [1], [0, 0, 1, 1], [], []>} : vector<16x32xf32>, vector<32x128xf32>, vector<16x128xf32> -> vector<16x128xf32>
    %c0_20 = arith.constant 0 : index
    %c0_21 = arith.constant 0 : index
    %39 = vector.load %arg7[%c0_20, %c0_21] : memref<1x128xf32, #tpu.memory_space<vmem>>, vector<1x128xf32>
    %40 = vector.broadcast %39 : vector<1x128xf32> to vector<16x128xf32>
    %41 = arith.addf %38, %40 : vector<16x128xf32>
    %c0_22 = arith.constant 0 : index
    %c0_23 = arith.constant 0 : index
    %42 = vector.load %arg8[%c0_22, %c0_23] : memref<16x128xf32, #tpu.memory_space<vmem>>, vector<16x128xf32>
    tpu.vector_store %arg8[%c0_22, %c0_23], %41 {strides = array<i32>} : memref<16x128xf32, #tpu.memory_space<vmem>>, vector<16x128xf32>,
    return
  }
  func.func @transform_0(%arg0: i32) -> (i32, i32) {
    %c0_i32 = arith.constant 0 : i32
    %c0_i32_0 = arith.constant 0 : i32
    return %arg0, %c0_i32 : i32, i32
  }
  func.func @transform_1(%arg0: i32) -> (i32, i32) {
    %c0_i32 = arith.constant 0 : i32
    %c0_i32_0 = arith.constant 0 : i32
    %c0_i32_1 = arith.constant 0 : i32
    return %c0_i32, %c0_i32_0 : i32, i32
  }
  func.func @transform_2(%arg0: i32) -> (i32, i32) {
    %c0_i32 = arith.constant 0 : i32
    %c0_i32_0 = arith.constant 0 : i32
    %c0_i32_1 = arith.constant 0 : i32
    return %c0_i32, %c0_i32_0 : i32, i32
  }
  func.func @transform_3(%arg0: i32) -> (i32, i32) {
    %c0_i32 = arith.constant 0 : i32
    %c0_i32_0 = arith.constant 0 : i32
    %c0_i32_1 = arith.constant 0 : i32
    return %c0_i32, %c0_i32_0 : i32, i32
  }
  func.func @transform_4(%arg0: i32) -> (i32, i32) {
    %c0_i32 = arith.constant 0 : i32
    %c0_i32_0 = arith.constant 0 : i32
    %c0_i32_1 = arith.constant 0 : i32
    return %c0_i32, %c0_i32_0 : i32, i32
  }
  func.func @transform_5(%arg0: i32) -> (i32, i32) {
    %c0_i32 = arith.constant 0 : i32
    %c0_i32_0 = arith.constant 0 : i32
    %c0_i32_1 = arith.constant 0 : i32
    return %c0_i32, %c0_i32_0 : i32, i32
  }
  func.func @transform_6(%arg0: i32) -> (i32, i32) {
    %c0_i32 = arith.constant 0 : i32
    %c0_i32_0 = arith.constant 0 : i32
    %c0_i32_1 = arith.constant 0 : i32
    return %c0_i32, %c0_i32_0 : i32, i32
  }
  func.func @transform_7(%arg0: i32) -> (i32, i32) {
    %c0_i32 = arith.constant 0 : i32
    %c0_i32_0 = arith.constant 0 : i32
    return %arg0, %c0_i32 : i32, i32
  }
}

</mosaic_0001>

<bundles_post_ra>
// kernel: tpu_custom_call.1
= control target key start
LH: loop header
LB: loop body
LE: loop exit
PB: predicated region body
PF: predicated region fallthrough
CT: control target
= control target key end

     0   :  { %12 = vsyncpa [#allocation3], 0  ;;  %s540_s0 = inlined_call_operand.hbm [shape: f32[16,32], index: 0, kind: input, shape index: {}]   ;;  %s541_s1 = inlined_call_operand.hbm [shape: bf16[32,32], index: 1, kind: input, shape index: {}]   ;;  %s542_s2 = inlined_call_operand.vmem [shape: f32[1,32], index: 2, kind: input, shape index: {}]   ;;  %s543_s3 = inlined_call_operand.vmem [shape: f32[1,32], index: 3, kind: input, shape index: {}]   ;;  %s544_s4 = inlined_call_operand.vmem [shape: f32[1,32], index: 4, kind: input, shape index: {}]   ;;  %s545_s5 = inlined_call_operand.hbm [shape: f32[32,128], index: 5, kind: input, shape index: {}]   ;;  %s546_s6 = inlined_call_operand.vmem [shape: f32[1,128], index: 6, kind: input, shape index: {}]   ;;  %s547_s7 = inlined_call_operand.hbm [shape: f32[16,128], index: 7, kind: output, shape index: {}]  }
   0x1   :  { %13 = vsyncpa [#allocation6], 0 }
   0x2   :  { %14 = vsyncpa [#allocation4], 0  ;;  %s450_s24 = smov [#allocation5]  }
   0x3   :  { %s32_s25 = sshll.u32 %s450_s24, 4  ;;  %s33_s25 = int_to_ptr.vmem [resolvable:$true] %s32_s25 }
   0x4   :  { %s372_s26 = scalar_lea.vmem %s33_s25, 256  ;;  %p377_p1 = scmp.lt.s32.totalorder %s33_s25, %s33_s25 }
   0x5   :  { %p373_p0 = scmp.ne.s32.totalorder %s33_s25, %s372_s26  ;;  %p378_p2 = scmp.lt.s32.totalorder %s372_s26, %s372_s26 }
   0x7   :  { %p379_p3 = por %p378_p2, %p377_p1 }
   0x9   :  { %p380_p4 = pnand %p379_p3, %p373_p0 }
   0xb   :  { %383 = shalt.err (!%p380_p4)
}
   0xc   :  { %s451_s27 = smov 64   ;;  %s452_s28 = smov 4  }
   0xd   :  { %38 = dma.hbm_to_vmem [thread:$0]  %s541_s1, 256, %s33_s25, [#allocation6], %s451_s27, %s451_s27, %s452_s28  }
   0xe   :  { %s453_s8 = smov [#allocation2]  }
   0xf   :  { %s20_s9 = sshll.u32 %s453_s8, 4  ;;  %s21_s9 = int_to_ptr.vmem [resolvable:$true] %s20_s9 }
  0x10   :  { %s392_s10 = scalar_lea.vmem %s21_s9, 256  ;;  %p397_p6 = scmp.lt.s32.totalorder %s21_s9, %s21_s9 }
  0x11   :  { %p393_p5 = scmp.ne.s32.totalorder %s21_s9, %s392_s10  ;;  %p398_p7 = scmp.lt.s32.totalorder %s392_s10, %s392_s10 }
  0x13   :  { %p399_p8 = por %p398_p7, %p397_p6 }
  0x15   :  { %p400_p9 = pnand %p399_p8, %p393_p5 }
  0x17   :  { %403 = shalt.err (!%p400_p9)
}
  0x18   :  { %s454_s11 = smov 128   ;;  %s455_s12 = smov 8  }
  0x19   :  { %26 = dma.hbm_to_vmem [thread:$0]  %s540_s0, 256, %s21_s9, [#allocation3], %s454_s11, %s454_s11, %s455_s12  }
  0x1a   :  { %s456_s1 = smov [#allocation7]  }
  0x1b   :  { %s50_s15 = sshll.u32 %s456_s1, 4  ;;  %s51_s15 = int_to_ptr.vmem [resolvable:$true] %s50_s15 }
  0x1c   :  { %s412_s16 = scalar_lea.vmem %s51_s15, 512  ;;  %p417_p11 = scmp.lt.s32.totalorder %s51_s15, %s51_s15 }
  0x1d   :  { %p413_p10 = scmp.ne.s32.totalorder %s51_s15, %s412_s16  ;;  %p418_p12 = scmp.lt.s32.totalorder %s412_s16, %s412_s16 }
  0x1f   :  { %p419_p13 = por %p418_p12, %p417_p11 }
  0x21   :  { %p420_p0 = pnand %p419_p13, %p413_p10 }
  0x23   :  { %423 = shalt.err (!%p420_p0)
}
  0x24   :  { %56 = dma.hbm_to_vmem [thread:$0]  %s545_s5, 512, %s51_s15, [#allocation6], %s454_s11, %s454_s11, %s455_s12  }
  0x25   :  { %444 = dma.done.wait [#allocation3], 256  }
  0x26   :  { %445 = vsyncadd [#allocation3], 4294967040 }
  0x27   :  { %446 = dma.done.wait [#allocation6], 768  }
  0x28   :  { %447 = vsyncadd [#allocation6], 4294966528  ;;  %v457_v0 = vmov 0.0   ;;  %vm458_vm0 = vmmov 0   ;;  %v354_v1 = vld [vmem:[#allocation5 + $0x8] sm:$0xff]   ;;  %v355_v2 = vld [vmem:[#allocation5] sm:$0xff]  }
  0x29   :  { %325 = vmatprep.subr.bf16.mxu0 %v457_v0  ;;  %329 = vmatprep.mubr.msk.bf16.mxu0 %vm458_vm0, %v457_v0  ;;  %v69_v3 = vld [vmem:[#allocation2] sm:$0xff]  ;;  %v70_v4 = vld [vmem:[#allocation2 + $0x8] sm:$0xff]  ;;  %vm95_vm1 = vcmask 261120   ;;  %v198_v35 = vld [vmem:[#allocation7 + $0x18] sm:$0xff] }
  0x2a   :  { %326 = vmatpush3.bf16.msra.mxu0 %v354_v1  ;;  %v71_v5 = vpack.c.bf16 %v70_v4, %v69_v3  ;;  %v307_v6 = vld [vmem:[%s542_s2] ss:$0 sm:$0xff]  ;;  %v197_v36 = vld [vmem:[#allocation7 + $0x10] sm:$0xff]  ;;  %333 = vmatprep.subr.mxu1 %v198_v35  ;;  %v196_v37 = vld [vmem:[#allocation7 + $0x8] sm:$0xff] }
  0x2b   :  { %327 = vmatprep.subr.bf16.mxu0 %v457_v0  ;;  %334 = vmatpush3.msra.mxu1 %v198_v35  ;;  %v195_v38 = vld [vmem:[#allocation7] sm:$0xff] }
  0x2c   :  { %335 = vmatprep.subr.mxu1 %v197_v36  ;;  %v311_v46 = vld [vmem:[%s543_s3] ss:$0 sm:$0xff]  ;;  %s459_s3 = smov [#allocation8]  }
  0x2d   :  { %336 = vmatpush3.msra.mxu1 %v197_v36  ;;  %v312_v48 = vld [vmem:[%s544_s4] ss:$0 sm:$0xff]  ;;  %s294_s24 = sshll.u32 %s459_s3, 4  ;;  %s295_s24 = int_to_ptr.vmem [resolvable:$true] %s294_s24 }
  0x2e   :  { %328 = vmatpush3.bf16.msra.mxu0 %v355_v2  ;;  %337 = vmatprep.subr.mxu1 %v196_v37  ;;  %v313_v55 = vld [vmem:[%s546_s6] ss:$0 sm:$0xff]  ;;  %s424_s4 = scalar_lea.vmem %s295_s24, 256  ;;  %p429_p2 = scmp.lt.s32.totalorder %s295_s24, %s295_s24 }
  0x2f   :  { %338 = vmatpush3.msra.mxu1 %v196_v37  ;;  %p425_p1 = scmp.ne.s32.totalorder %s295_s24, %s424_s4  ;;  %p430_p3 = scmp.lt.s32.totalorder %s424_s4, %s424_s4 }
  0x30   :  { %339 = vmatprep.subr.mxu1 %v195_v38 }
  0x31   :  { %330 = vmatmul.mubr.msk.bf16.vlgmr.msra.gmra.mxu0 %vm95_vm1, %v71_v5  ;;  %340 = vmatpush3.msra.mxu1 %v195_v38  ;;  %p431_p4 = por %p430_p3, %p429_p2 }
  0x33   :  { %p432_p5 = pnand %p431_p4, %p425_p1 }
  0xf1   :  { %v133_v7 = vpop.f32.mrf.mxu0 }
  0xf2   :  { %v134_v8 = vadd.f32 %v307_v6, %v133_v7 }
  0xf3   :  { %v331_v9 = vpop.f32.mrf.mxu0 }
  0xf4   :  { %v142_v10 = vmul.f32 0.70710677, %v134_v8  ;;  %v140_v16 = vmul.f32 0.5, %v134_v8 }
  0xf5   :  { %v136_v11 = vpop.f32.mrf.mxu0 }
  0xf6   :  { %356 = verf.f32 %v142_v10  ;;  %v137_v12 = vadd.f32 %v307_v6, %v136_v11 }
  0xf7   :  { %v332_v13 = vpop.f32.mrf.mxu0 }
  0xf8   :  { %v143_v14 = vmul.f32 0.70710677, %v137_v12  ;;  %v141_v20 = vmul.f32 0.5, %v137_v12 }
  0xfa   :  { %358 = verf.f32 %v143_v14 }
 0x103   :  { %v357_v15 = vpop.eup %356 }
 0x104   :  { %v146_v17 = vadd.f32 1.0, %v357_v15 }
 0x106   :  { %v148_v18 = vmul.f32 %v146_v17, %v140_v16 }
 0x107   :  { %v359_v19 = vpop.eup %358 }
 0x108   :  { %v150_v21 = vsel %vm95_vm1, %v148_v18, 0.0  ;;  %v147_v22 = vadd.f32 1.0, %v359_v19 }
 0x109   :  { %151 = vadd.xlane.f32.xlu0 %v150_v21 }
 0x10a   :  { %v149_v23 = vmul.f32 %v147_v22, %v141_v20 }
 0x10c   :  { %v153_v24 = vsel %vm95_vm1, %v149_v23, 0.0 }
 0x10d   :  { %154 = vadd.xlane.f32.xlu0 %v153_v24 }
 0x192   :  { %v152_v25 = vpop.xlane.xlu0 %151 }
 0x193   :  { %v157_v26 = vmul.f32 0.03125, %v152_v25 }
 0x195   :  { %v159_v27 = vsub.f32 %v148_v18, %v157_v26 }
 0x196   :  { %v155_v28 = vpop.xlane.xlu0 %154 }
 0x197   :  { %v158_v29 = vmul.f32 0.03125, %v155_v28  ;;  %v161_v30 = vmul.f32 %v159_v27, %v159_v27 }
 0x199   :  { %v160_v31 = vsub.f32 %v149_v23, %v158_v29  ;;  %v163_v32 = vsel %vm95_vm1, %v161_v30, 0.0 }
 0x19a   :  { %164 = vadd.xlane.f32.xlu1 %v163_v32 }
 0x19b   :  { %v162_v33 = vmul.f32 %v160_v31, %v160_v31 }
 0x19d   :  { %v166_v34 = vsel %vm95_vm1, %v162_v33, 0.0 }
 0x19e   :  { %167 = vadd.xlane.f32.xlu1 %v166_v34 }
 0x223   :  { %v165_v39 = vpop.xlane.xlu1 %164 }
 0x224   :  { %v169_v40 = vmul.f32 0.03125, %v165_v39 }
 0x226   :  { %v171_v41 = vadd.f32 1e-05, %v169_v40 }
 0x227   :  { %v168_v42 = vpop.xlane.xlu1 %167 }
 0x228   :  { %360 = vrsqrt.f32 %v171_v41  ;;  %v170_v43 = vmul.f32 0.03125, %v168_v42 }
 0x22a   :  { %v172_v44 = vadd.f32 1e-05, %v170_v43 }
 0x22c   :  { %362 = vrsqrt.f32 %v172_v44 }
 0x235   :  { %v361_v45 = vpop.eup %360 }
 0x236   :  { %v175_v47 = vmul.f32 %v361_v45, %v159_v27 }
 0x238   :  { %v184_v49 = vmul.f32 %v311_v46, %v175_v47 }
 0x239   :  { %v363_v50 = vpop.eup %362 }
 0x23a   :  { %v176_v51 = vmul.f32 %v363_v50, %v160_v31  ;;  %v193_v52 = vadd.f32 %v312_v48, %v184_v49 }
 0x23c   :  { %v185_v53 = vmul.f32 %v311_v46, %v176_v51  ;;  %341 = vmatprep.mubr.msk.f32.mxu1 %vm95_vm1, %v193_v52 }
 0x23e   :  { %v194_v54 = vadd.f32 %v312_v48, %v185_v53 }
 0x240   :  { %342 = vmatmul.mubr.msk.f32.vlgmr.msra.gmra.mxu1 %vm95_vm1, %v194_v54 }
 0x300   :  { %v343_v56 = vpop.f32.mrf.mxu1 }
 0x301   :  { %v284_v57 = vadd.f32 %v343_v56, %v313_v55 }
 0x302   :  { %v278_v58 = vpop.f32.mrf.mxu1 }
 0x303   :  { %288 = vst [vmem:[#allocation8 + $0x8] sm:$0xff] %v284_v57  ;;  %v279_v59 = vadd.f32 %v313_v55, %v278_v58 }
 0x305   :  { %287 = vst [vmem:[#allocation8] sm:$0xff] %v279_v59 }
 0x306   :  { %435 = shalt.err (!%p432_p5)
}
 0x307   :  { %300 = dma.vmem_to_hbm [thread:$0]  %s295_s24, 256, %s547_s7, [#allocation4], %s454_s11, %s454_s11, %s455_s12  }
 0x308   :  { %448 = dma.done.wait [#allocation4], 256  }
 0x309   :  { %449 = vsyncadd [#allocation4], 4294967040 }
 0x30a   :  { %304 = vsyncpa [#allocation3], 1 }
 0x30b   :  { %305 = vsyncpa [#allocation6], 1 }
 0x30c   :  { %306 = vsyncpa [#allocation4], 1 }

</bundles_post_ra>
